<compile_context>
chip_gen: v6e
topology: v6e:2x2x1
jax: 0.10.0
libtpu: 0.0.40
codegen_flags: <defaults>
</compile_context>

<pallas_src>
import jax
import jax.numpy as jnp
from jax import lax
from jax.experimental import pallas as pl
from jax.experimental.pallas import tpu as pltpu


# --------------------------------------------------------------------------
# Stage A: feature path (pool -> fc1+sigmoid -> layer-0 gate pre-compute)
# --------------------------------------------------------------------------
def _prologue_kernel(feat_ref, coords_ref, pool_ref, w1_ref, b1_ref,
                     wih0x_ref, wih0c_ref, bias0_ref, gx0_ref):
    # ResNet-18 tail: global average pool as a single bf16 MXU matmul
    # pool_ref: [Tt, Tt*HW] block-diag (1/HW), feat_ref: [Tt*HW, C] bf16.
    pooled = jnp.dot(pool_ref[...], feat_ref[...],
                     preferred_element_type=jnp.float32)            # [Tt, C] f32

    # fc1 + sigmoid (tanh-form sigmoid: one EUP op, no exp/divide)
    z = jnp.dot(pooled.astype(jnp.bfloat16), w1_ref[...],
                preferred_element_type=jnp.float32) + b1_ref[...]
    x = 0.5 * jnp.tanh(0.5 * z) + 0.5                                # [Tt, M]

    # layer-0 LSTM input contribution for this tile of timesteps;
    # torch.cat((x, coords), 1) @ W_ih0^T is done as a split matmul and both
    # (time-invariant) LSTM biases are folded in here.
    gx0_ref[...] = (
        jnp.dot(x, wih0x_ref[...], preferred_element_type=jnp.float32)
        + jnp.dot(coords_ref[...], wih0c_ref[...],
                  preferred_element_type=jnp.float32)
        + bias0_ref[...]
    )


# --------------------------------------------------------------------------
# Stage B: serial LSTM recurrence + fused output heads
# --------------------------------------------------------------------------
def _make_recurrent_kernel(T, H, L):
    """Ref order:
      gx0 [T,4H],
      whh_l [H,4H] for l = 0..L-1,
      (wih_l [H,4H], bias_l [1,4H]) for l = 1..L-1   (bias_l = bih_l + bhh_l),
      w_head [H,128], b_head [1,128],
      out_head [T,128]
    """

    def kernel(*refs):
        it = iter(refs)
        gx0_ref = next(it)
        whh_refs = [next(it) for _ in range(L)]
        upper_refs = [(next(it), next(it)) for _ in range(L - 1)]
        whead_ref = next(it)
        bhead_ref = next(it)
        out_ref = next(it)

        # Hoist all time-invariant weights out of the recurrence; at H=32 they
        # are only a handful of vregs and stay register-resident.
        whh = [r[...] for r in whh_refs]
        upper = [(w[...], b[...]) for (w, b) in upper_refs]
        w_head = whead_ref[...]
        b_head = bhead_ref[...]

        def sigmoid(zz):  # tanh-based sigmoid: one EUP push, no divide
            return 0.5 * jnp.tanh(0.5 * zz) + 0.5

        zero = jnp.zeros((1, H), jnp.float32)
        hs = [zero] * L
        cs = [zero] * L

        # Last-layer outputs accumulated in registers via row masks -> avoids
        # T narrow masked [1,H] stores and the post-loop reload.
        lo = jnp.zeros((T, H), jnp.float32)
        row_ids = lax.broadcasted_iota(jnp.int32, (T, H), 0)

        # Fully static unroll: the whole recurrence is visible to the
        # scheduler, no loop-carry overhead, all slice indices are constants.
        for t in range(T):
            for l in range(L):
                if l == 0:
                    xpart = gx0_ref[t:t + 1, :]          # biases already folded
                else:
                    w_ih, b_u = upper[l - 1]
                    xpart = jnp.dot(hs[l - 1], w_ih,
                                    preferred_element_type=jnp.float32) + b_u
                g = xpart + jnp.dot(hs[l], whh[l],
                                    preferred_element_type=jnp.float32)  # [1,4H]

                # Two full-width EUP pushes instead of five narrow gate slices.
                sg = sigmoid(g)
                th = jnp.tanh(g)
                # PyTorch nn.LSTM gate order: i, f, g, o
                i_g = sg[:, 0:H]
                f_g = sg[:, H:2 * H]
                o_g = sg[:, 3 * H:4 * H]
                g_g = th[:, 2 * H:3 * H]

                c_new = f_g * cs[l] + i_g * g_g
                h_new = o_g * jnp.tanh(c_new)
                cs[l] = c_new
                hs[l] = h_new

            lo = jnp.where(row_ids == t, hs[L - 1], lo)

        # Fused fc2 (tanh) + fc3 (sigmoid) head: one MXU matmul, one lane-dense
        # [T,128] store; columns 0:6 = vel, column 6 = claw, rest padding.
        y = jnp.dot(lo, w_head, preferred_element_type=jnp.float32) + b_head
        lane = lax.broadcasted_iota(jnp.int32, y.shape, 1)
        out_ref[...] = jnp.where(lane < 6, jnp.tanh(y), sigmoid(y))

    return kernel


# --------------------------------------------------------------------------
# Wrapper
# --------------------------------------------------------------------------
def lstm_controller_forward(feat, coords, params, *, hidden_dim,
                            middle_out_dim, layers, time_tile=8):
    T, HW, C = feat.shape
    H, M, L = hidden_dim, middle_out_dim, layers
    Tt = min(time_tile, T)
    assert T % Tt == 0, "sequence length must be a multiple of the time tile"

    f32, bf16 = jnp.float32, jnp.bfloat16

    # ---- Stage-A operands: bf16 feature path (MXU-native), pool as matmul.
    feat2d = feat.reshape(T * HW, C).astype(bf16)
    pool_mat = (jnp.kron(jnp.eye(Tt, dtype=f32),
                         jnp.ones((1, HW), f32)) / HW).astype(bf16)   # [Tt,Tt*HW]
    coords_p = jnp.zeros((T, 8), f32).at[:, :3].set(coords)            # pad K=3->8
    wih0c_p = jnp.zeros((8, 4 * H), f32).at[:3, :].set(params["wih0_c"])
    bias0 = params["bih0"] + params["bhh0"]

    gx0 = pl.pallas_call(
        _prologue_kernel,
        out_shape=jax.ShapeDtypeStruct((T, 4 * H), f32),
        grid_spec=pltpu.PrefetchScalarGridSpec(
            num_scalar_prefetch=0,
            grid=(T // Tt,),
            in_specs=[
                pl.BlockSpec((Tt * HW, C), lambda i: (i, 0)),      # feat tile
                pl.BlockSpec((Tt, 8), lambda i: (i, 0)),           # coords tile
                pl.BlockSpec((Tt, Tt * HW), lambda i: (0, 0)),     # pooling mat
                pl.BlockSpec((C, M), lambda i: (0, 0)),            # w1 (bf16)
                pl.BlockSpec((1, M), lambda i: (0, 0)),            # b1
                pl.BlockSpec((M, 4 * H), lambda i: (0, 0)),        # wih0_x
                pl.BlockSpec((8, 4 * H), lambda i: (0, 0)),        # wih0_c (pad)
                pl.BlockSpec((1, 4 * H), lambda i: (0, 0)),        # bih0+bhh0
            ],
            out_specs=pl.BlockSpec((Tt, 4 * H), lambda i: (i, 0)),
        ),
        compiler_params=pltpu.CompilerParams(
            dimension_semantics=("parallel",),
            vmem_limit_bytes=64 * 1024 * 1024,
        ),
    )(feat2d, coords_p, pool_mat,
      params["w1"].astype(bf16), params["b1"],
      params["wih0_x"], wih0c_p, bias0)

    # ---- Stage-B operands: recurrent weights, combined biases, fused head.
    whh_list = [params["whh0"]] + [params[f"whh{l}"] for l in range(1, L)]
    upper_flat = []
    for l in range(1, L):
        upper_flat += [params[f"wih{l}"], params[f"bih{l}"] + params[f"bhh{l}"]]

    HEAD = 128  # lane-dense fused head: cols 0:6 = fc2, col 6 = fc3, rest pad
    w_head = (jnp.zeros((H, HEAD), f32)
              .at[:, 0:6].set(params["w2"])
              .at[:, 6:7].set(params["w3"]))
    b_head = (jnp.zeros((1, HEAD), f32)
              .at[:, 0:6].set(params["b2"])
              .at[:, 6:7].set(params["b3"]))

    args_b = [gx0, *whh_list, *upper_flat, w_head, b_head]
    out_head = pl.pallas_call(
        _make_recurrent_kernel(T, H, L),
        out_shape=jax.ShapeDtypeStruct((T, HEAD), f32),
        in_specs=[pl.BlockSpec(memory_space=pltpu.MemorySpace.VMEM)] * len(args_b),
        out_specs=pl.BlockSpec(memory_space=pltpu.MemorySpace.VMEM),
    )(*args_b)

    return out_head[:, 0:6], out_head[:, 6:7]


# --------------------------------------------------------------------------
# Pure-JAX (fp32) reference mirroring the PyTorch forward
# --------------------------------------------------------------------------
def reference_forward(feat, coords, params, *, hidden_dim, middle_out_dim, layers):
    H, M, L = hidden_dim, middle_out_dim, layers
    T = feat.shape[0]
    pooled = feat.mean(axis=1)
    x = jax.nn.sigmoid(pooled @ params["w1"] + params["b1"])
    X = jnp.concatenate([x, coords], axis=1)  # [T, M+3]
    wih0 = jnp.concatenate([params["wih0_x"], params["wih0_c"]], axis=0)

    hs = [jnp.zeros((1, H), jnp.float32) for _ in range(L)]
    cs = [jnp.zeros((1, H), jnp.float32) for _ in range(L)]
    outs = []
    for t in range(T):
        inp = X[t:t + 1]
        for l in range(L):
            if l == 0:
                g = inp @ wih0 + params["bih0"] + params["bhh0"] + hs[l] @ params["whh0"]
            else:
                g = (inp @ params[f"wih{l}"] + params[f"bih{l}"]
                     + params[f"bhh{l}"] + hs[l] @ params[f"whh{l}"])
            i_g = jax.nn.sigmoid(g[:, 0:H])
            f_g = jax.nn.sigmoid(g[:, H:2 * H])
            g_g = jnp.tanh(g[:, 2 * H:3 * H])
            o_g = jax.nn.sigmoid(g[:, 3 * H:4 * H])
            cs[l] = f_g * cs[l] + i_g * g_g
            hs[l] = o_g * jnp.tanh(cs[l])
            inp = hs[l]
        outs.append(hs[L - 1])
    lo = jnp.concatenate(outs, axis=0)  # [T, H]
    out_vel = jnp.tanh(lo @ params["w2"] + params["b2"])
    out_claw = jax.nn.sigmoid(lo @ params["w3"] + params["b3"])
    return out_vel, out_claw


def init_params(key, *, cnn_out_dim, middle_out_dim, hidden_dim, layers):
    """Deterministic synthetic parameters (weights stored transposed for x @ W)."""
    C, M, H, L = cnn_out_dim, middle_out_dim, hidden_dim, layers
    keys = iter(jax.random.split(key, 16 + 8 * L))
    nrm = lambda shape, s=0.1: (s * jax.random.normal(next(keys), shape)).astype(jnp.float32)

    p = {
        "w1": nrm((C, M)), "b1": nrm((1, M)),
        "wih0_x": nrm((M, 4 * H)), "wih0_c": nrm((3, 4 * H)),
        "whh0": nrm((H, 4 * H)), "bih0": nrm((1, 4 * H)), "bhh0": nrm((1, 4 * H)),
        "w2": nrm((H, 6)), "b2": nrm((1, 6)),
        "w3": nrm((H, 1)), "b3": nrm((1, 1)),
    }
    for l in range(1, L):
        p[f"wih{l}"] = nrm((H, 4 * H))
        p[f"whh{l}"] = nrm((H, 4 * H))
        p[f"bih{l}"] = nrm((1, 4 * H))
        p[f"bhh{l}"] = nrm((1, 4 * H))
    return p


if __name__ == "__main__":
    # small but shape-consistent config (avg_pool=True => cnn_out_dim = 512)
    T = 8            # sequence length (len(X) in the PyTorch forward)
    HF = WF = 4      # synthetic feature-map spatial dims
    C = 512          # ResNet-18 channel dim
    M = 32           # middle_out_dim
    H = 32           # hidden_dim
    L = 2            # LSTM layers

    key = jax.random.PRNGKey(0)
    k_feat, k_coords, k_params = jax.random.split(key, 3)

    feat = jax.random.normal(k_feat, (T, HF * WF, C), dtype=jnp.float32)
    coords = jax.random.normal(k_coords, (T, 3), dtype=jnp.float32)
    params = init_params(k_params, cnn_out_dim=C, middle_out_dim=M,
                         hidden_dim=H, layers=L)

    vel, claw = lstm_controller_forward(
        feat, coords, params, hidden_dim=H, middle_out_dim=M, layers=L)
    jax.block_until_ready((vel, claw))

    vel_ref, claw_ref = reference_forward(
        feat, coords, params, hidden_dim=H, middle_out_dim=M, layers=L)

    assert vel.shape == (T, 6) and claw.shape == (T, 1)
    # Feature-path matmuls run in bf16 (MXU-native); compare against the fp32
    # reference with a correspondingly looser tolerance.
    assert jnp.allclose(vel, vel_ref, rtol=1e-2, atol=1e-2)
    assert jnp.allclose(claw, claw_ref, rtol=1e-2, atol=1e-2)

    print("KERNEL_OK")
</pallas_src>

<mosaic_0001>
module attributes {stable_mosaic.version = 11 : i64} {
  func.func @_prologue_kernel(%arg0: i32, %arg1: memref<128x512xbf16, #tpu.memory_space<vmem>>, %arg2: memref<8x8xf32, #tpu.memory_space<vmem>>, %arg3: memref<8x128xbf16, #tpu.memory_space<vmem>>, %arg4: memref<512x32xbf16, #tpu.memory_space<vmem>>, %arg5: memref<1x32xf32, #tpu.memory_space<vmem>>, %arg6: memref<32x128xf32, #tpu.memory_space<vmem>>, %arg7: memref<8x128xf32, #tpu.memory_space<vmem>>, %arg8: memref<1x128xf32, #tpu.memory_space<vmem>>, %arg9: memref<8x128xf32, #tpu.memory_space<vmem>>) attributes {dimension_semantics = [#tpu.dimension_semantics<parallel>], iteration_bounds = array<i64: 1>, scalar_prefetch = 0 : i64, scratch_operands = 0 : i64, tpu.core_type = #tpu.core_type<tc>, window_params = [{transform_indices = @transform_0, window_bounds = array<i64: 128, 512>}, {transform_indices = @transform_1, window_bounds = array<i64: 8, 8>}, {pipeline_mode = #tpu.pipeline_mode<synchronous>, transform_indices = @transform_2, window_bounds = array<i64: 8, 128>}, {pipeline_mode = #tpu.pipeline_mode<synchronous>, transform_indices = @transform_3, window_bounds = array<i64: 512, 32>}, {pipeline_mode = #tpu.pipeline_mode<synchronous>, transform_indices = @transform_4, window_bounds = array<i64: 1, 32>}, {pipeline_mode = #tpu.pipeline_mode<synchronous>, transform_indices = @transform_5, window_bounds = array<i64: 32, 128>}, {pipeline_mode = #tpu.pipeline_mode<synchronous>, transform_indices = @transform_6, window_bounds = array<i64: 8, 128>}, {pipeline_mode = #tpu.pipeline_mode<synchronous>, transform_indices = @transform_7, window_bounds = array<i64: 1, 128>}, {transform_indices = @transform_8, window_bounds = array<i64: 8, 128>}]} {
    %c0 = arith.constant 0 : index
    %c0_0 = arith.constant 0 : index
    %0 = vector.load %arg3[%c0, %c0_0] : memref<8x128xbf16, #tpu.memory_space<vmem>>, vector<8x128xbf16>
    %c0_1 = arith.constant 0 : index
    %c0_2 = arith.constant 0 : index
    %1 = vector.load %arg1[%c0_1, %c0_2] : memref<128x512xbf16, #tpu.memory_space<vmem>>, vector<128x512xbf16>
    %cst = arith.constant dense<0.000000e+00> : vector<8x512xf32>
    %2 = tpu.matmul %0, %1, %cst {dimension_numbers = #tpu.dot_dimension_numbers<[1], [0], [0], [1], [0, 0, 1, 1], [], []>} : vector<8x128xbf16>, vector<128x512xbf16>, vector<8x512xf32> -> vector<8x512xf32>
    %3 = arith.truncf %2 : vector<8x512xf32> to vector<8x512xbf16>
    %c0_3 = arith.constant 0 : index
    %c0_4 = arith.constant 0 : index
    %4 = vector.load %arg4[%c0_3, %c0_4] : memref<512x32xbf16, #tpu.memory_space<vmem>>, vector<512x32xbf16>
    %cst_5 = arith.constant dense<0.000000e+00> : vector<8x32xf32>
    %5 = tpu.matmul %3, %4, %cst_5 {dimension_numbers = #tpu.dot_dimension_numbers<[1], [0], [0], [1], [0, 0, 1, 1], [], []>} : vector<8x512xbf16>, vector<512x32xbf16>, vector<8x32xf32> -> vector<8x32xf32>
    %c0_6 = arith.constant 0 : index
    %c0_7 = arith.constant 0 : index
    %6 = vector.load %arg5[%c0_6, %c0_7] : memref<1x32xf32, #tpu.memory_space<vmem>>, vector<1x32xf32>
    %7 = vector.broadcast %6 : vector<1x32xf32> to vector<8x32xf32>
    %8 = arith.addf %5, %7 : vector<8x32xf32>
    %cst_8 = arith.constant 5.000000e-01 : f32
    %9 = vector.broadcast %cst_8 : f32 to vector<8x32xf32>
    %10 = arith.mulf %9, %8 : vector<8x32xf32>
    %11 = math.tanh %10 : vector<8x32xf32>
    %cst_9 = arith.constant 5.000000e-01 : f32
    %12 = vector.broadcast %cst_9 : f32 to vector<8x32xf32>
    %13 = arith.mulf %12, %11 : vector<8x32xf32>
    %cst_10 = arith.constant 5.000000e-01 : f32
    %14 = vector.broadcast %cst_10 : f32 to vector<8x32xf32>
    %15 = arith.addf %13, %14 : vector<8x32xf32>
    %c0_11 = arith.constant 0 : index
    %c0_12 = arith.constant 0 : index
    %16 = vector.load %arg6[%c0_11, %c0_12] : memref<32x128xf32, #tpu.memory_space<vmem>>, vector<32x128xf32>
    %cst_13 = arith.constant dense<0.000000e+00> : vector<8x128xf32>
    %17 = tpu.matmul %15, %16, %cst_13 {dimension_numbers = #tpu.dot_dimension_numbers<[1], [0], [0], [1], [0, 0, 1, 1], [], []>} : vector<8x32xf32>, vector<32x128xf32>, vector<8x128xf32> -> vector<8x128xf32>
    %c0_14 = arith.constant 0 : index
    %c0_15 = arith.constant 0 : index
    %18 = vector.load %arg2[%c0_14, %c0_15] : memref<8x8xf32, #tpu.memory_space<vmem>>, vector<8x8xf32>
    %c0_16 = arith.constant 0 : index
    %c0_17 = arith.constant 0 : index
    %19 = vector.load %arg7[%c0_16, %c0_17] : memref<8x128xf32, #tpu.memory_space<vmem>>, vector<8x128xf32>
    %cst_18 = arith.constant dense<0.000000e+00> : vector<8x128xf32>
    %20 = tpu.matmul %18, %19, %cst_18 {dimension_numbers = #tpu.dot_dimension_numbers<[1], [0], [0], [1], [0, 0, 1, 1], [], []>} : vector<8x8xf32>, vector<8x128xf32>, vector<8x128xf32> -> vector<8x128xf32>
    %21 = arith.addf %17, %20 : vector<8x128xf32>
    %c0_19 = arith.constant 0 : index
    %c0_20 = arith.constant 0 : index
    %22 = vector.load %arg8[%c0_19, %c0_20] : memref<1x128xf32, #tpu.memory_space<vmem>>, vector<1x128xf32>
    %23 = vector.broadcast %22 : vector<1x128xf32> to vector<8x128xf32>
    %24 = arith.addf %21, %23 : vector<8x128xf32>
    %c0_21 = arith.constant 0 : index
    %c0_22 = arith.constant 0 : index
    %25 = vector.load %arg9[%c0_21, %c0_22] : memref<8x128xf32, #tpu.memory_space<vmem>>, vector<8x128xf32>
    tpu.vector_store %arg9[%c0_21, %c0_22], %24 {strides = array<i32>} : memref<8x128xf32, #tpu.memory_space<vmem>>, vector<8x128xf32>,
    return
  }
  func.func @transform_0(%arg0: i32) -> (i32, i32) {
    %c0_i32 = arith.constant 0 : i32
    %c0_i32_0 = arith.constant 0 : i32
    return %arg0, %c0_i32 : i32, i32
  }
  func.func @transform_1(%arg0: i32) -> (i32, i32) {
    %c0_i32 = arith.constant 0 : i32
    %c0_i32_0 = arith.constant 0 : i32
    return %arg0, %c0_i32 : i32, i32
  }
  func.func @transform_2(%arg0: i32) -> (i32, i32) {
    %c0_i32 = arith.constant 0 : i32
    %c0_i32_0 = arith.constant 0 : i32
    %c0_i32_1 = arith.constant 0 : i32
    return %c0_i32, %c0_i32_0 : i32, i32
  }
  func.func @transform_3(%arg0: i32) -> (i32, i32) {
    %c0_i32 = arith.constant 0 : i32
    %c0_i32_0 = arith.constant 0 : i32
    %c0_i32_1 = arith.constant 0 : i32
    return %c0_i32, %c0_i32_0 : i32, i32
  }
  func.func @transform_4(%arg0: i32) -> (i32, i32) {
    %c0_i32 = arith.constant 0 : i32
    %c0_i32_0 = arith.constant 0 : i32
    %c0_i32_1 = arith.constant 0 : i32
    return %c0_i32, %c0_i32_0 : i32, i32
  }
  func.func @transform_5(%arg0: i32) -> (i32, i32) {
    %c0_i32 = arith.constant 0 : i32
    %c0_i32_0 = arith.constant 0 : i32
    %c0_i32_1 = arith.constant 0 : i32
    return %c0_i32, %c0_i32_0 : i32, i32
  }
  func.func @transform_6(%arg0: i32) -> (i32, i32) {
    %c0_i32 = arith.constant 0 : i32
    %c0_i32_0 = arith.constant 0 : i32
    %c0_i32_1 = arith.constant 0 : i32
    return %c0_i32, %c0_i32_0 : i32, i32
  }
  func.func @transform_7(%arg0: i32) -> (i32, i32) {
    %c0_i32 = arith.constant 0 : i32
    %c0_i32_0 = arith.constant 0 : i32
    %c0_i32_1 = arith.constant 0 : i32
    return %c0_i32, %c0_i32_0 : i32, i32
  }
  func.func @transform_8(%arg0: i32) -> (i32, i32) {
    %c0_i32 = arith.constant 0 : i32
    %c0_i32_0 = arith.constant 0 : i32
    return %arg0, %c0_i32 : i32, i32
  }
}

</mosaic_0001>

<bundles_post_ra>
// kernel: tpu_custom_call.1
= control target key start
LH: loop header
LB: loop body
LE: loop exit
PB: predicated region body
PF: predicated region fallthrough
CT: control target
= control target key end

     0   :  { %v1077_v2 = vmov 0   ;;  %s1348_s0 = inlined_call_operand.vmem [shape: bf16[128,512], index: 0, kind: input, shape index: {}]   ;;  %s1349_s1 = inlined_call_operand.vmem [shape: f32[8,8], index: 1, kind: input, shape index: {}]   ;;  %s1350_s2 = inlined_call_operand.vmem [shape: bf16[8,128], index: 2, kind: input, shape index: {}]   ;;  %s1351_s3 = inlined_call_operand.vmem [shape: bf16[512,32], index: 3, kind: input, shape index: {}]   ;;  %s1352_s4 = inlined_call_operand.vmem [shape: f32[1,32], index: 4, kind: input, shape index: {}]   ;;  %s1353_s5 = inlined_call_operand.vmem [shape: f32[32,128], index: 5, kind: input, shape index: {}]   ;;  %s1354_s6 = inlined_call_operand.vmem [shape: f32[8,128], index: 6, kind: input, shape index: {}]   ;;  %s1355_s7 = inlined_call_operand.vmem [shape: f32[1,128], index: 7, kind: input, shape index: {}]   ;;  %s1356_s8 = inlined_call_operand.hbm [shape: f32[8,128], index: 8, kind: output, shape index: {}]  }
   0x1   :  { %v973_v0 = vld [vmem:[%s1348_s0 + $0xe4] ss:$16 sps:$4 sm:$0xff]   ;;  %v975_v1 = vld [vmem:[%s1348_s0 + $0xec] ss:$16 sps:$4 sm:$0xff]   ;;  %256 = vmatprep.mubr.bf16.mxu0 %v1077_v2  ;;  %297 = vmatprep.mubr.bf16.mxu1 %v1077_v2  ;;  %v977_v3 = vld [vmem:[%s1348_s0 + $0xe0] ss:$16 sps:$4 sm:$0xff]  }
   0x2   :  { %224 = vmatprep.subr.bf16.mxu0 %v973_v0  ;;  %v978_v4 = vld [vmem:[%s1348_s0 + $0xe8] ss:$16 sps:$4 sm:$0xff]   ;;  %265 = vmatprep.subr.bf16.mxu1 %v975_v1  ;;  %v979_v5 = vld [vmem:[%s1348_s0 + $0xc4] ss:$16 sps:$4 sm:$0xff]   ;;  %v981_v6 = vld [vmem:[%s1348_s0 + $0xcc] ss:$16 sps:$4 sm:$0xff]  }
   0x3   :  { %225 = vmatpush1.bf16.msra.mxu0 %v977_v3  ;;  %266 = vmatpush1.bf16.msra.mxu1 %v978_v4  ;;  %v983_v7 = vld [vmem:[%s1348_s0 + $0xc0] ss:$16 sps:$4 sm:$0xff]   ;;  %v984_v8 = vld [vmem:[%s1348_s0 + $0xc8] ss:$16 sps:$4 sm:$0xff]   ;;  %v985_v9 = vld [vmem:[%s1348_s0 + $0xa4] ss:$16 sps:$4 sm:$0xff]  }
   0x4   :  { %226 = vmatprep.subr.bf16.mxu0 %v979_v5  ;;  %267 = vmatprep.subr.bf16.mxu1 %v981_v6  ;;  %v987_v10 = vld [vmem:[%s1348_s0 + $0xac] ss:$16 sps:$4 sm:$0xff]   ;;  %v989_v11 = vld [vmem:[%s1348_s0 + $0xa0] ss:$16 sps:$4 sm:$0xff]   ;;  %v990_v12 = vld [vmem:[%s1348_s0 + $0xa8] ss:$16 sps:$4 sm:$0xff]  }
   0x5   :  { %v991_v13 = vld [vmem:[%s1348_s0 + $0x84] ss:$16 sps:$4 sm:$0xff]   ;;  %v993_v14 = vld [vmem:[%s1348_s0 + $0x8c] ss:$16 sps:$4 sm:$0xff]   ;;  %v995_v15 = vld [vmem:[%s1348_s0 + $0x80] ss:$16 sps:$4 sm:$0xff]  }
   0x6   :  { %v996_v16 = vld [vmem:[%s1348_s0 + $0x88] ss:$16 sps:$4 sm:$0xff]   ;;  %v997_v17 = vld [vmem:[%s1348_s0 + $0x64] ss:$16 sps:$4 sm:$0xff]   ;;  %v999_v18 = vld [vmem:[%s1348_s0 + $0x6c] ss:$16 sps:$4 sm:$0xff]  }
   0x7   :  { %227 = vmatpush1.bf16.msra.mxu0 %v983_v7  ;;  %268 = vmatpush1.bf16.msra.mxu1 %v984_v8  ;;  %v1001_v19 = vld [vmem:[%s1348_s0 + $0x60] ss:$16 sps:$4 sm:$0xff]   ;;  %v1002_v20 = vld [vmem:[%s1348_s0 + $0x68] ss:$16 sps:$4 sm:$0xff]   ;;  %v1003_v21 = vld [vmem:[%s1348_s0 + $0x44] ss:$16 sps:$4 sm:$0xff]  }
   0x8   :  { %228 = vmatprep.subr.bf16.mxu0 %v985_v9  ;;  %269 = vmatprep.subr.bf16.mxu1 %v987_v10  ;;  %v1005_v22 = vld [vmem:[%s1348_s0 + $0x4c] ss:$16 sps:$4 sm:$0xff]   ;;  %v1007_v23 = vld [vmem:[%s1348_s0 + $0x40] ss:$16 sps:$4 sm:$0xff]   ;;  %v1008_v24 = vld [vmem:[%s1348_s0 + $0x48] ss:$16 sps:$4 sm:$0xff]  }
   0x9   :  { %v1009_v25 = vld [vmem:[%s1348_s0 + $0x24] ss:$16 sps:$4 sm:$0xff]   ;;  %v1011_v26 = vld [vmem:[%s1348_s0 + $0x2c] ss:$16 sps:$4 sm:$0xff]   ;;  %v1013_v27 = vld [vmem:[%s1348_s0 + $0x20] ss:$16 sps:$4 sm:$0xff]  }
   0xa   :  { %v1014_v28 = vld [vmem:[%s1348_s0 + $0x28] ss:$16 sps:$4 sm:$0xff]   ;;  %v1015_v29 = vld [vmem:[%s1348_s0 + $0x4] ss:$16 sps:$4 sm:$0xff]   ;;  %v1017_v30 = vld [vmem:[%s1348_s0 + $0xc] ss:$16 sps:$4 sm:$0xff]  }
   0xb   :  { %229 = vmatpush1.bf16.msra.mxu0 %v989_v11  ;;  %270 = vmatpush1.bf16.msra.mxu1 %v990_v12  ;;  %v1019_v31 = vld [vmem:[%s1348_s0] ss:$16 sps:$4 sm:$0xff]   ;;  %v1020_v32 = vld [vmem:[%s1348_s0 + $0x8] ss:$16 sps:$4 sm:$0xff]  }
   0xc   :  { %230 = vmatprep.subr.bf16.mxu0 %v991_v13  ;;  %271 = vmatprep.subr.bf16.mxu1 %v993_v14  ;;  %v1021_v33 = vld [vmem:[%s1351_s3 + $0x78] sm:$0xff]   ;;  %v31_v35 = vld [vmem:[%s1350_s2] sm:$0xf]  ;;  %v1025_v38 = vld [vmem:[%s1351_s3 + $0x70] sm:$0xff]  }
   0xd   :  { %v1022_v34 = vld [vmem:[%s1351_s3 + $0xf8] sm:$0xff]   ;;  %v1026_v39 = vld [vmem:[%s1351_s3 + $0xf0] sm:$0xff]   ;;  %v1029_v42 = vld [vmem:[%s1351_s3 + $0x68] sm:$0xff]  }
   0xe   :  { %v1023_v36 = vld [vmem:[%s1351_s3 + $0x38] sm:$0xff]   ;;  %v1027_v40 = vld [vmem:[%s1351_s3 + $0x30] sm:$0xff]   ;;  %v1030_v43 = vld [vmem:[%s1351_s3 + $0xe8] sm:$0xff]  }
   0xf   :  { %231 = vmatpush1.bf16.msra.mxu0 %v995_v15  ;;  %272 = vmatpush1.bf16.msra.mxu1 %v996_v16  ;;  %v1024_v37 = vld [vmem:[%s1351_s3 + $0xb8] sm:$0xff]   ;;  %v1028_v41 = vld [vmem:[%s1351_s3 + $0xb0] sm:$0xff]   ;;  %v1031_v44 = vld [vmem:[%s1351_s3 + $0x28] sm:$0xff]  }
  0x10   :  { %232 = vmatprep.subr.bf16.mxu0 %v997_v17  ;;  %273 = vmatprep.subr.bf16.mxu1 %v999_v18  ;;  %v1032_v45 = vld [vmem:[%s1351_s3 + $0xa8] sm:$0xff]   ;;  %v1033_v46 = vld [vmem:[%s1351_s3 + $0x60] sm:$0xff]   ;;  %v1037_v50 = vld [vmem:[%s1351_s3 + $0x58] sm:$0xff]  }
  0x11   :  { %v1034_v47 = vld [vmem:[%s1351_s3 + $0xe0] sm:$0xff]   ;;  %v1038_v51 = vld [vmem:[%s1351_s3 + $0xd8] sm:$0xff]   ;;  %v1041_v54 = vld [vmem:[%s1351_s3 + $0x50] sm:$0xff]  }
  0x12   :  { %v1035_v48 = vld [vmem:[%s1351_s3 + $0x20] sm:$0xff]   ;;  %v1039_v52 = vld [vmem:[%s1351_s3 + $0x18] sm:$0xff]   ;;  %v1042_v55 = vld [vmem:[%s1351_s3 + $0xd0] sm:$0xff]  }
  0x13   :  { %233 = vmatpush1.bf16.msra.mxu0 %v1001_v19  ;;  %274 = vmatpush1.bf16.msra.mxu1 %v1002_v20  ;;  %v1036_v49 = vld [vmem:[%s1351_s3 + $0xa0] sm:$0xff]   ;;  %v1040_v53 = vld [vmem:[%s1351_s3 + $0x98] sm:$0xff]   ;;  %v1043_v56 = vld [vmem:[%s1351_s3 + $0x10] sm:$0xff]  }
  0x14   :  { %234 = vmatprep.subr.bf16.mxu0 %v1003_v21  ;;  %275 = vmatprep.subr.bf16.mxu1 %v1005_v22  ;;  %v1044_v57 = vld [vmem:[%s1351_s3 + $0x90] sm:$0xff]  }
  0x17   :  { %235 = vmatpush1.bf16.msra.mxu0 %v1007_v23  ;;  %276 = vmatpush1.bf16.msra.mxu1 %v1008_v24 }
  0x18   :  { %236 = vmatprep.subr.bf16.mxu0 %v1009_v25  ;;  %277 = vmatprep.subr.bf16.mxu1 %v1011_v26 }
  0x1b   :  { %237 = vmatpush1.bf16.msra.mxu0 %v1013_v27  ;;  %278 = vmatpush1.bf16.msra.mxu1 %v1014_v28 }
  0x1c   :  { %238 = vmatprep.subr.bf16.mxu0 %v1015_v29  ;;  %279 = vmatprep.subr.bf16.mxu1 %v1017_v30 }
  0x1f   :  { %239 = vmatpush1.bf16.msra.mxu0 %v1019_v31  ;;  %280 = vmatpush1.bf16.msra.mxu1 %v1020_v32 }
  0x20   :  { %902 = vmatprep.subr.bf16.mxu0 %v1021_v33  ;;  %924 = vmatprep.subr.bf16.mxu1 %v1022_v34 }
  0x22   :  { %257 = vmatmul.mubr.bf16.vlgmr.msra.gmra.mxu0 %v31_v35  ;;  %298 = vmatmul.mubr.bf16.vlgmr.msra.gmra.mxu1 %v31_v35 }
  0x23   :  { %903 = vmatpush3.bf16.msra.mxu0 %v1023_v36  ;;  %925 = vmatpush3.bf16.msra.mxu1 %v1024_v37 }
  0x24   :  { %904 = vmatprep.subr.bf16.mxu0 %v1025_v38  ;;  %926 = vmatprep.subr.bf16.mxu1 %v1026_v39 }
  0x27   :  { %905 = vmatpush3.bf16.msra.mxu0 %v1027_v40  ;;  %927 = vmatpush3.bf16.msra.mxu1 %v1028_v41 }
  0x28   :  { %906 = vmatprep.subr.bf16.mxu0 %v1029_v42  ;;  %928 = vmatprep.subr.bf16.mxu1 %v1030_v43 }
  0x2b   :  { %907 = vmatpush3.bf16.msra.mxu0 %v1031_v44  ;;  %929 = vmatpush3.bf16.msra.mxu1 %v1032_v45 }
  0x2c   :  { %908 = vmatprep.subr.bf16.mxu0 %v1033_v46  ;;  %930 = vmatprep.subr.bf16.mxu1 %v1034_v47 }
  0x2f   :  { %909 = vmatpush3.bf16.msra.mxu0 %v1035_v48  ;;  %931 = vmatpush3.bf16.msra.mxu1 %v1036_v49 }
  0x30   :  { %910 = vmatprep.subr.bf16.mxu0 %v1037_v50  ;;  %932 = vmatprep.subr.bf16.mxu1 %v1038_v51 }
  0x33   :  { %911 = vmatpush3.bf16.msra.mxu0 %v1039_v52  ;;  %933 = vmatpush3.bf16.msra.mxu1 %v1040_v53 }
  0x34   :  { %13 = vsyncpa [#allocation3], 0  ;;  %912 = vmatprep.subr.bf16.mxu0 %v1041_v54  ;;  %934 = vmatprep.subr.bf16.mxu1 %v1042_v55  ;;  %v1045_v58 = vld [vmem:[%s1351_s3 + $0x48] sm:$0xff]   ;;  %v1049_v62 = vld [vmem:[%s1351_s3 + $0x40] sm:$0xff]   ;;  %v1078_v14 = vmov 0.0   ;;  %vm663_vm0 = vcmask 64512  }
  0x35   :  { %v1046_v59 = vld [vmem:[%s1351_s3 + $0xc8] sm:$0xff]   ;;  %v1050_v63 = vld [vmem:[%s1351_s3 + $0xc0] sm:$0xff]   ;;  %v660_v15 = vld [vmem:[%s1353_s5 + $0x18] sm:$0xff]  ;;  %vm1079_vm1 = vmmov 0   ;;  %vm737_vm2 = vcmask 261120  }
  0x36   :  { %v1047_v60 = vld [vmem:[%s1351_s3 + $0x8] sm:$0xff]   ;;  %v1051_v0 = vld [vmem:[%s1351_s3] sm:$0xff]   ;;  %v659_v16 = vld [vmem:[%s1353_s5 + $0x10] sm:$0xff] }
  0x37   :  { %913 = vmatpush3.bf16.msra.mxu0 %v1043_v56  ;;  %935 = vmatpush3.bf16.msra.mxu1 %v1044_v57  ;;  %v1048_v61 = vld [vmem:[%s1351_s3 + $0x88] sm:$0xff]   ;;  %v1052_v1 = vld [vmem:[%s1351_s3 + $0x80] sm:$0xff]  }
  0x38   :  { %914 = vmatprep.subr.bf16.mxu0 %v1045_v58  ;;  %936 = vmatprep.subr.bf16.mxu1 %v1046_v59  ;;  %v662_v17 = vld [vmem:[%s1354_s6] sm:$0xff]  ;;  %v658_v18 = vld [vmem:[%s1353_s5 + $0x8] sm:$0xff] }
  0x39   :  { %v661_v19 = vld [vmem:[%s1349_s1] sm:$0xff] }
  0x3a   :  { %v657_v20 = vld [vmem:[%s1353_s5] sm:$0xff]  ;;  %s1080_s5 = smov [#allocation2]  }
  0x3b   :  { %915 = vmatpush3.bf16.msra.mxu0 %v1047_v60  ;;  %937 = vmatpush3.bf16.msra.mxu1 %v1048_v61  ;;  %v866_v23 = vld [vmem:[%s1352_s4] ss:$0 sm:$0xff]  ;;  %s826_s9 = sshll.u32 %s1080_s5, 4  ;;  %s827_s9 = int_to_ptr.vmem [resolvable:$true] %s826_s9 }
  0x3c   :  { %916 = vmatprep.subr.bf16.mxu0 %v1049_v62  ;;  %938 = vmatprep.subr.bf16.mxu1 %v1050_v63  ;;  %v901_v41 = vld [vmem:[%s1355_s7] ss:$0 sm:$0xff]  ;;  %s1055_s10 = scalar_lea.vmem %s827_s9, 128  ;;  %p1060_p1 = scmp.lt.s32.totalorder %s827_s9, %s827_s9 }
  0x3d   :  { %p1056_p0 = scmp.ne.s32.totalorder %s827_s9, %s1055_s10  ;;  %p1061_p2 = scmp.lt.s32.totalorder %s1055_s10, %s1055_s10 }
  0x3f   :  { %917 = vmatpush3.bf16.msra.mxu0 %v1051_v0  ;;  %939 = vmatpush3.bf16.msra.mxu1 %v1052_v1  ;;  %p1062_p3 = por %p1061_p2, %p1060_p1 }
  0x40   :  { %953 = vmatprep.subr.mxu0 %v1078_v14  ;;  %958 = vmatprep.subr.mxu1 %v1078_v14 }
  0x41   :  { %p1063_p4 = pnand %p1062_p3, %p1056_p0 }
  0xe2   :  { %v258_v2 = vpop.f32.mrf.mxu0  ;;  %v299_v3 = vpop.f32.mrf.mxu1 }
  0xe3   :  { %v308_v4 = vpack.c.bf16 %v299_v3, %v299_v3  ;;  %v306_v9 = vpack.c.bf16 %v258_v2, %v258_v2 }
  0xe4   :  { %v260_v5 = vpop.f32.mrf.mxu0  ;;  %v301_v6 = vpop.f32.mrf.mxu1 }
  0xe5   :  { %v307_v7 = vpack.c.bf16 %v260_v5, %v260_v5  ;;  %v309_v8 = vpack.c.bf16 %v301_v6, %v301_v6 }
  0xe6   :  { %v262_v10 = vpop.f32.mrf.mxu0  ;;  %v303_v11 = vpop.f32.mrf.mxu1 }
  0xe7   :  { %605 = vmatprep.mubr.bf16.mxu0 %v307_v7  ;;  %645 = vmatprep.mubr.bf16.mxu1 %v309_v8 }
  0xe8   :  { %v263_v12 = vpop.f32.mrf.mxu0  ;;  %v304_v13 = vpop.f32.mrf.mxu1  ;;  %606 = vmatmul.mubr.bf16.vlgmr.msra.gmra.mxu0 %v306_v9  ;;  %646 = vmatmul.mubr.bf16.vlgmr.msra.gmra.mxu1 %v308_v4 }
  0xe9   :  { %959 = vmatpush3.msra.mxu1 %v660_v15  ;;  %954 = vmatpush3.msra.mxu0 %v662_v17 }
  0xea   :  { %960 = vmatprep.subr.mxu1 %v1078_v14  ;;  %955 = vmatprep.mubr.msk.f32.mxu0 %vm1079_vm1, %v1078_v14 }
  0xeb   :  { %961 = vmatpush3.msra.mxu1 %v659_v16  ;;  %966 = vmatprep.mubr.msk.f32.mxu1 %vm1079_vm1, %v1078_v14 }
  0xec   :  { %962 = vmatprep.subr.mxu1 %v1078_v14 }
  0xed   :  { %963 = vmatpush3.msra.mxu1 %v658_v18 }
  0xee   :  { %964 = vmatprep.subr.mxu1 %v1078_v14 }
  0xef   :  { %965 = vmatpush3.msra.mxu1 %v657_v20 }
  0xf0   :  { %956 = vmatmul.mubr.msk.f32.vlgmr.msra.gmra.mxu0 %vm663_vm0, %v661_v19 }
 0x1a8   :  { %v918_v21 = vpop.f32.mrf.mxu0  ;;  %v940_v22 = vpop.f32.mrf.mxu1 }
 0x1aa   :  { %v919_v24 = vpop.f32.mrf.mxu0  ;;  %v941_v25 = vpop.f32.mrf.mxu1 }
 0x1ab   :  { %v920_v26 = vadd.f32 %v919_v24, %v918_v21  ;;  %v942_v30 = vadd.f32 %v941_v25, %v940_v22 }
 0x1ac   :  { %v921_v27 = vpop.f32.mrf.mxu0  ;;  %v943_v28 = vpop.f32.mrf.mxu1 }
 0x1ad   :  { %v608_v29 = vadd.f32 %v920_v26, %v866_v23 }
 0x1ae   :  { %v922_v31 = vpop.f32.mrf.mxu0  ;;  %v944_v32 = vpop.f32.mrf.mxu1 }
 0x1af   :  { %v648_v33 = vadd.f32 %v942_v30, %v608_v29 }
 0x1b0   :  { %v733_v38 = vpop.f32.mrf.mxu0 }
 0x1b1   :  { %v653_v34 = vmul.f32 0.5, %v648_v33 }
 0x1b2   :  { %v957_v39 = vpop.f32.mrf.mxu0 }
 0x1b3   :  { %1053 = vtanh.f32 %v653_v34 }
 0x1c0   :  { %v1054_v35 = vpop.eup %1053 }
 0x1c1   :  { %v655_v36 = vmul.f32 0.5, %v1054_v35 }
 0x1c3   :  { %v656_v37 = vadd.f32 0.5, %v655_v36 }
 0x1c5   :  { %967 = vmatmul.mubr.msk.f32.vlgmr.msra.gmra.mxu1 %vm737_vm2, %v656_v37 }
 0x285   :  { %v807_v40 = vpop.f32.mrf.mxu1 }
 0x286   :  { %v808_v42 = vadd.f32 %v807_v40, %v733_v38 }
 0x287   :  { %v968_v43 = vpop.f32.mrf.mxu1 }
 0x288   :  { %v818_v44 = vadd.f32 %v901_v41, %v808_v42 }
 0x28a   :  { %819 = vst [vmem:[#allocation2] sm:$0xff] %v818_v44 }
 0x28b   :  { %1066 = shalt.err (!%p1063_p4)
}
 0x28c   :  { %829 = dma.vmem_to_hbm [thread:$0]  %s827_s9, 128, %s1356_s8, [#allocation3]  }
 0x28d   :  { %1075 = dma.done.wait [#allocation3], 128  }
 0x28e   :  { %1076 = vsyncadd [#allocation3], 4294967168 }
 0x28f   :  { %833 = vsyncpa [#allocation3], 1 }

</bundles_post_ra>
